<compile_context>
chip_gen: v5e
topology: v5e:2x2
jax: 0.10.0
libtpu: 0.0.40
codegen_flags: <defaults>
</compile_context>

<pallas_src>
import functools

import jax
import jax.numpy as jnp
from jax.experimental import pallas as pl
from jax.experimental.pallas import tpu as pltpu


def _round_up(a: int, m: int) -> int:
    return (a + m - 1) // m * m


# ----------------------------- Pallas kernel ------------------------------- #

def _mlp_kernel(x_ref, *refs, num_hidden: int):
    """Fused MLP forward for one row tile.

    refs layout:
      [w_0, b_0, scale_0, shift_0, ..., w_{H-1}, b_{H-1}, scale_{H-1}, shift_{H-1},
       w_last, b_last, hid_out_ref, logits_out_ref]
    All weights are (in, out); biases / scale / shift are (1, out).
    """
    h = x_ref[...]
    k = 0
    for _ in range(num_hidden):
        w, b, sc, sh = refs[k], refs[k + 1], refs[k + 2], refs[k + 3]
        k += 4
        h = jnp.dot(h, w[...], preferred_element_type=jnp.float32) + b[...]
        h = jnp.maximum(h, 0.0)          # ReLU
        h = h * sc[...] + sh[...]        # BatchNorm1d (eval), folded
        # F.dropout(training=False) == identity
    w_last, b_last = refs[k], refs[k + 1]
    hid_ref, out_ref = refs[k + 2], refs[k + 3]
    hid_ref[...] = h
    out_ref[...] = (jnp.dot(h, w_last[...], preferred_element_type=jnp.float32)
                    + b_last[...])


# ------------------------------ JAX wrapper -------------------------------- #

def prepare_kernel_params(params, *, eps: float = 1e-5, lane_multiple: int = 128):
    """Pre-transpose weights to (in,out), fold BN into scale/shift, and zero-pad
    hidden/output feature dims up to a multiple of `lane_multiple`."""
    lins = params["lins"]   # list of (W(out,in), b(out,))
    bns = params["bns"]     # list of dict(gamma, beta, mean, var)
    num_layers = len(lins)
    ws, bs, scs, shs, true_dims = [], [], [], [], []
    prev_in = lins[0][0].shape[1]          # in_channels (never padded)
    for l in range(num_layers):
        W, b = lins[l]
        out_f, in_f = W.shape
        out_pad = _round_up(out_f, lane_multiple)
        Wt = jnp.zeros((prev_in, out_pad), jnp.float32)
        Wt = Wt.at[:in_f, :out_f].set(W.T.astype(jnp.float32))
        bp = jnp.zeros((1, out_pad), jnp.float32).at[0, :out_f].set(b)
        ws.append(Wt)
        bs.append(bp)
        true_dims.append(out_f)
        if l < num_layers - 1:
            bn = bns[l]
            sc = bn["gamma"] * jax.lax.rsqrt(bn["var"] + eps)
            sh = bn["beta"] - bn["mean"] * sc
            scs.append(jnp.ones((1, out_pad), jnp.float32).at[0, :out_f].set(sc))
            shs.append(jnp.zeros((1, out_pad), jnp.float32).at[0, :out_f].set(sh))
        prev_in = out_pad
    return dict(w=ws, b=bs, scale=scs, shift=shs, dims=true_dims)


def mlp_forward(kparams, x, *, block_rows: int = 512):
    ws, bs, scs, shs = kparams["w"], kparams["b"], kparams["scale"], kparams["shift"]
    dims = kparams["dims"]
    num_layers = len(ws)
    num_hidden = num_layers - 1

    N, fin = x.shape
    x = x.astype(jnp.float32)

    # Row tiling: tm divisible by 8, N padded up to a multiple of tm.
    tm = min(block_rows, _round_up(N, 8))
    n_pad = _round_up(N, tm)
    if n_pad != N:
        x = jnp.pad(x, ((0, n_pad - N), (0, 0)))
    grid = (n_pad // tm,)

    hid_pad = ws[-1].shape[0] if num_hidden > 0 else fin   # (padded) width of h
    out_pad = ws[-1].shape[1]

    _rep = lambda i: (0, 0)        # weights stay resident across grid steps
    in_specs = [pl.BlockSpec((tm, fin), lambda i: (i, 0))]
    inputs = [x]
    for l in range(num_hidden):
        for a in (ws[l], bs[l], scs[l], shs[l]):
            in_specs.append(pl.BlockSpec(a.shape, _rep))
            inputs.append(a)
    for a in (ws[-1], bs[-1]):
        in_specs.append(pl.BlockSpec(a.shape, _rep))
        inputs.append(a)

    out_shape = (jax.ShapeDtypeStruct((n_pad, hid_pad), jnp.float32),
                 jax.ShapeDtypeStruct((n_pad, out_pad), jnp.float32))
    out_specs = (pl.BlockSpec((tm, hid_pad), lambda i: (i, 0)),
                 pl.BlockSpec((tm, out_pad), lambda i: (i, 0)))

    hid, logits = pl.pallas_call(
        functools.partial(_mlp_kernel, num_hidden=num_hidden),
        grid=grid,
        in_specs=in_specs,
        out_specs=out_specs,
        out_shape=out_shape,
        compiler_params=pltpu.CompilerParams(
            dimension_semantics=("parallel",),
            vmem_limit_bytes=32 * 1024 * 1024),
    )(*inputs)

    hid_true = dims[num_hidden - 1] if num_hidden > 0 else fin
    out_true = dims[-1]
    return hid[:N, :hid_true], logits[:N, :out_true]


# ------------------------- reference & parameter init ----------------------- #

def mlp_reference(params, x, *, eps: float = 1e-5):
    """Pure-JAX reference of the PyTorch forward (eval mode)."""
    lins, bns = params["lins"], params["bns"]
    h = x
    for l in range(len(lins) - 1):
        W, b = lins[l]
        h = h @ W.T + b
        h = jnp.maximum(h, 0.0)
        bn = bns[l]
        h = (h - bn["mean"]) * jax.lax.rsqrt(bn["var"] + eps) * bn["gamma"] + bn["beta"]
        # dropout (inference) = identity
    W, b = lins[-1]
    return h, h @ W.T + b


def init_params(key, in_channels, hidden_channels, out_channels, num_layers):
    """PyTorch-style init: Linear ~ U(+/-1/sqrt(fan_in)); BN with (random) affine
    + running stats so the eval-mode folding is exercised."""
    def linear(k, out_f, in_f):
        kw, kb = jax.random.split(k)
        bound = 1.0 / jnp.sqrt(in_f)
        W = jax.random.uniform(kw, (out_f, in_f), jnp.float32, -bound, bound)
        b = jax.random.uniform(kb, (out_f,), jnp.float32, -bound, bound)
        return W, b

    def batchnorm(k, feat):
        kg, kb, km, kv = jax.random.split(k, 4)
        return dict(
            gamma=jax.random.uniform(kg, (feat,), jnp.float32, 0.5, 1.5),
            beta=0.1 * jax.random.normal(kb, (feat,), jnp.float32),
            mean=0.1 * jax.random.normal(km, (feat,), jnp.float32),
            var=jax.random.uniform(kv, (feat,), jnp.float32, 0.5, 1.5))

    lins, bns = [], []
    keys = jax.random.split(key, 2 * num_layers)
    if num_layers == 1:
        lins.append(linear(keys[0], out_channels, in_channels))
    else:
        lins.append(linear(keys[0], hidden_channels, in_channels))
        bns.append(batchnorm(keys[1], hidden_channels))
        for i in range(num_layers - 2):
            lins.append(linear(keys[2 * (i + 1)], hidden_channels, hidden_channels))
            bns.append(batchnorm(keys[2 * (i + 1) + 1], hidden_channels))
        lins.append(linear(keys[-2], out_channels, hidden_channels))
    return dict(lins=lins, bns=bns)


# ---------------------------------- main ------------------------------------ #

if __name__ == "__main__":
    # Small demo shapes: 256 nodes, 64 input feats, 64 hidden, 16 classes, 3 layers.
    N, in_ch, hidden, out_ch, num_layers = 256, 64, 64, 16, 3

    key = jax.random.PRNGKey(0)
    kx, kp = jax.random.split(key)
    x = jax.random.normal(kx, (N, in_ch), jnp.float32)
    params = init_params(kp, in_ch, hidden, out_ch, num_layers)

    kparams = prepare_kernel_params(params)
    feat, logits = mlp_forward(kparams, x, block_rows=128)   # grid = (2,)
    jax.block_until_ready((feat, logits))

    assert feat.shape == (N, hidden) and logits.shape == (N, out_ch)

    # Sanity check against the pure-JAX reference (loose tolerance to absorb
    # MXU-vs-XLA f32 matmul precision differences).
    ref_feat, ref_logits = mlp_reference(params, x)
    err_f = float(jnp.max(jnp.abs(feat - ref_feat)))
    err_l = float(jnp.max(jnp.abs(logits - ref_logits)))
    assert err_f < 1e-1 and err_l < 1e-1, (err_f, err_l)

    print("KERNEL_OK")
</pallas_src>

<mosaic_0001>
module attributes {stable_mosaic.version = 11 : i64} {
  func.func @_mlp_kernel(%arg0: i32, %arg1: memref<128x64xf32, #tpu.memory_space<vmem>>, %arg2: memref<64x128xf32, #tpu.memory_space<vmem>>, %arg3: memref<1x128xf32, #tpu.memory_space<vmem>>, %arg4: memref<1x128xf32, #tpu.memory_space<vmem>>, %arg5: memref<1x128xf32, #tpu.memory_space<vmem>>, %arg6: memref<128x128xf32, #tpu.memory_space<vmem>>, %arg7: memref<1x128xf32, #tpu.memory_space<vmem>>, %arg8: memref<1x128xf32, #tpu.memory_space<vmem>>, %arg9: memref<1x128xf32, #tpu.memory_space<vmem>>, %arg10: memref<128x128xf32, #tpu.memory_space<vmem>>, %arg11: memref<1x128xf32, #tpu.memory_space<vmem>>, %arg12: memref<128x128xf32, #tpu.memory_space<vmem>>, %arg13: memref<128x128xf32, #tpu.memory_space<vmem>>) attributes {dimension_semantics = [#tpu.dimension_semantics<parallel>], iteration_bounds = array<i64: 2>, scalar_prefetch = 0 : i64, scratch_operands = 0 : i64, tpu.core_type = #tpu.core_type<tc>, window_params = [{transform_indices = @transform_0, window_bounds = array<i64: 128, 64>}, {pipeline_mode = #tpu.pipeline_mode<synchronous>, transform_indices = @transform_1, window_bounds = array<i64: 64, 128>}, {pipeline_mode = #tpu.pipeline_mode<synchronous>, transform_indices = @transform_2, window_bounds = array<i64: 1, 128>}, {pipeline_mode = #tpu.pipeline_mode<synchronous>, transform_indices = @transform_3, window_bounds = array<i64: 1, 128>}, {pipeline_mode = #tpu.pipeline_mode<synchronous>, transform_indices = @transform_4, window_bounds = array<i64: 1, 128>}, {pipeline_mode = #tpu.pipeline_mode<synchronous>, transform_indices = @transform_5, window_bounds = array<i64: 128, 128>}, {pipeline_mode = #tpu.pipeline_mode<synchronous>, transform_indices = @transform_6, window_bounds = array<i64: 1, 128>}, {pipeline_mode = #tpu.pipeline_mode<synchronous>, transform_indices = @transform_7, window_bounds = array<i64: 1, 128>}, {pipeline_mode = #tpu.pipeline_mode<synchronous>, transform_indices = @transform_8, window_bounds = array<i64: 1, 128>}, {pipeline_mode = #tpu.pipeline_mode<synchronous>, transform_indices = @transform_9, window_bounds = array<i64: 128, 128>}, {pipeline_mode = #tpu.pipeline_mode<synchronous>, transform_indices = @transform_10, window_bounds = array<i64: 1, 128>}, {transform_indices = @transform_11, window_bounds = array<i64: 128, 128>}, {transform_indices = @transform_12, window_bounds = array<i64: 128, 128>}]} {
    %c0 = arith.constant 0 : index
    %c0_0 = arith.constant 0 : index
    %0 = vector.load %arg1[%c0, %c0_0] : memref<128x64xf32, #tpu.memory_space<vmem>>, vector<128x64xf32>
    %c0_1 = arith.constant 0 : index
    %c0_2 = arith.constant 0 : index
    %1 = vector.load %arg2[%c0_1, %c0_2] : memref<64x128xf32, #tpu.memory_space<vmem>>, vector<64x128xf32>
    %cst = arith.constant dense<0.000000e+00> : vector<128x128xf32>
    %2 = tpu.matmul %0, %1, %cst {dimension_numbers = #tpu.dot_dimension_numbers<[1], [0], [0], [1], [0, 0, 1, 1], [], []>} : vector<128x64xf32>, vector<64x128xf32>, vector<128x128xf32> -> vector<128x128xf32>
    %c0_3 = arith.constant 0 : index
    %c0_4 = arith.constant 0 : index
    %3 = vector.load %arg3[%c0_3, %c0_4] : memref<1x128xf32, #tpu.memory_space<vmem>>, vector<1x128xf32>
    %4 = vector.broadcast %3 : vector<1x128xf32> to vector<128x128xf32>
    %5 = arith.addf %2, %4 : vector<128x128xf32>
    %cst_5 = arith.constant 0.000000e+00 : f32
    %6 = vector.broadcast %cst_5 : f32 to vector<128x128xf32>
    %7 = arith.maximumf %5, %6 : vector<128x128xf32>
    %c0_6 = arith.constant 0 : index
    %c0_7 = arith.constant 0 : index
    %8 = vector.load %arg4[%c0_6, %c0_7] : memref<1x128xf32, #tpu.memory_space<vmem>>, vector<1x128xf32>
    %9 = vector.broadcast %8 : vector<1x128xf32> to vector<128x128xf32>
    %10 = arith.mulf %7, %9 : vector<128x128xf32>
    %c0_8 = arith.constant 0 : index
    %c0_9 = arith.constant 0 : index
    %11 = vector.load %arg5[%c0_8, %c0_9] : memref<1x128xf32, #tpu.memory_space<vmem>>, vector<1x128xf32>
    %12 = vector.broadcast %11 : vector<1x128xf32> to vector<128x128xf32>
    %13 = arith.addf %10, %12 : vector<128x128xf32>
    %c0_10 = arith.constant 0 : index
    %c0_11 = arith.constant 0 : index
    %14 = vector.load %arg6[%c0_10, %c0_11] : memref<128x128xf32, #tpu.memory_space<vmem>>, vector<128x128xf32>
    %cst_12 = arith.constant dense<0.000000e+00> : vector<128x128xf32>
    %15 = tpu.matmul %13, %14, %cst_12 {dimension_numbers = #tpu.dot_dimension_numbers<[1], [0], [0], [1], [0, 0, 1, 1], [], []>} : vector<128x128xf32>, vector<128x128xf32>, vector<128x128xf32> -> vector<128x128xf32>
    %c0_13 = arith.constant 0 : index
    %c0_14 = arith.constant 0 : index
    %16 = vector.load %arg7[%c0_13, %c0_14] : memref<1x128xf32, #tpu.memory_space<vmem>>, vector<1x128xf32>
    %17 = vector.broadcast %16 : vector<1x128xf32> to vector<128x128xf32>
    %18 = arith.addf %15, %17 : vector<128x128xf32>
    %cst_15 = arith.constant 0.000000e+00 : f32
    %19 = vector.broadcast %cst_15 : f32 to vector<128x128xf32>
    %20 = arith.maximumf %18, %19 : vector<128x128xf32>
    %c0_16 = arith.constant 0 : index
    %c0_17 = arith.constant 0 : index
    %21 = vector.load %arg8[%c0_16, %c0_17] : memref<1x128xf32, #tpu.memory_space<vmem>>, vector<1x128xf32>
    %22 = vector.broadcast %21 : vector<1x128xf32> to vector<128x128xf32>
    %23 = arith.mulf %20, %22 : vector<128x128xf32>
    %c0_18 = arith.constant 0 : index
    %c0_19 = arith.constant 0 : index
    %24 = vector.load %arg9[%c0_18, %c0_19] : memref<1x128xf32, #tpu.memory_space<vmem>>, vector<1x128xf32>
    %25 = vector.broadcast %24 : vector<1x128xf32> to vector<128x128xf32>
    %26 = arith.addf %23, %25 : vector<128x128xf32>
    %c0_20 = arith.constant 0 : index
    %c0_21 = arith.constant 0 : index
    %27 = vector.load %arg12[%c0_20, %c0_21] : memref<128x128xf32, #tpu.memory_space<vmem>>, vector<128x128xf32>
    tpu.vector_store %arg12[%c0_20, %c0_21], %26 {strides = array<i32>} : memref<128x128xf32, #tpu.memory_space<vmem>>, vector<128x128xf32>,
    %c0_22 = arith.constant 0 : index
    %c0_23 = arith.constant 0 : index
    %28 = vector.load %arg10[%c0_22, %c0_23] : memref<128x128xf32, #tpu.memory_space<vmem>>, vector<128x128xf32>
    %cst_24 = arith.constant dense<0.000000e+00> : vector<128x128xf32>
    %29 = tpu.matmul %26, %28, %cst_24 {dimension_numbers = #tpu.dot_dimension_numbers<[1], [0], [0], [1], [0, 0, 1, 1], [], []>} : vector<128x128xf32>, vector<128x128xf32>, vector<128x128xf32> -> vector<128x128xf32>
    %c0_25 = arith.constant 0 : index
    %c0_26 = arith.constant 0 : index
    %30 = vector.load %arg11[%c0_25, %c0_26] : memref<1x128xf32, #tpu.memory_space<vmem>>, vector<1x128xf32>
    %31 = vector.broadcast %30 : vector<1x128xf32> to vector<128x128xf32>
    %32 = arith.addf %29, %31 : vector<128x128xf32>
    %c0_27 = arith.constant 0 : index
    %c0_28 = arith.constant 0 : index
    %33 = vector.load %arg13[%c0_27, %c0_28] : memref<128x128xf32, #tpu.memory_space<vmem>>, vector<128x128xf32>
    tpu.vector_store %arg13[%c0_27, %c0_28], %32 {strides = array<i32>} : memref<128x128xf32, #tpu.memory_space<vmem>>, vector<128x128xf32>,
    return
  }
  func.func @transform_0(%arg0: i32) -> (i32, i32) {
    %c0_i32 = arith.constant 0 : i32
    %c0_i32_0 = arith.constant 0 : i32
    return %arg0, %c0_i32 : i32, i32
  }
  func.func @transform_1(%arg0: i32) -> (i32, i32) {
    %c0_i32 = arith.constant 0 : i32
    %c0_i32_0 = arith.constant 0 : i32
    %c0_i32_1 = arith.constant 0 : i32
    return %c0_i32, %c0_i32_0 : i32, i32
  }
  func.func @transform_2(%arg0: i32) -> (i32, i32) {
    %c0_i32 = arith.constant 0 : i32
    %c0_i32_0 = arith.constant 0 : i32
    %c0_i32_1 = arith.constant 0 : i32
    return %c0_i32, %c0_i32_0 : i32, i32
  }
  func.func @transform_3(%arg0: i32) -> (i32, i32) {
    %c0_i32 = arith.constant 0 : i32
    %c0_i32_0 = arith.constant 0 : i32
    %c0_i32_1 = arith.constant 0 : i32
    return %c0_i32, %c0_i32_0 : i32, i32
  }
  func.func @transform_4(%arg0: i32) -> (i32, i32) {
    %c0_i32 = arith.constant 0 : i32
    %c0_i32_0 = arith.constant 0 : i32
    %c0_i32_1 = arith.constant 0 : i32
    return %c0_i32, %c0_i32_0 : i32, i32
  }
  func.func @transform_5(%arg0: i32) -> (i32, i32) {
    %c0_i32 = arith.constant 0 : i32
    %c0_i32_0 = arith.constant 0 : i32
    %c0_i32_1 = arith.constant 0 : i32
    return %c0_i32, %c0_i32_0 : i32, i32
  }
  func.func @transform_6(%arg0: i32) -> (i32, i32) {
    %c0_i32 = arith.constant 0 : i32
    %c0_i32_0 = arith.constant 0 : i32
    %c0_i32_1 = arith.constant 0 : i32
    return %c0_i32, %c0_i32_0 : i32, i32
  }
  func.func @transform_7(%arg0: i32) -> (i32, i32) {
    %c0_i32 = arith.constant 0 : i32
    %c0_i32_0 = arith.constant 0 : i32
    %c0_i32_1 = arith.constant 0 : i32
    return %c0_i32, %c0_i32_0 : i32, i32
  }
  func.func @transform_8(%arg0: i32) -> (i32, i32) {
    %c0_i32 = arith.constant 0 : i32
    %c0_i32_0 = arith.constant 0 : i32
    %c0_i32_1 = arith.constant 0 : i32
    return %c0_i32, %c0_i32_0 : i32, i32
  }
  func.func @transform_9(%arg0: i32) -> (i32, i32) {
    %c0_i32 = arith.constant 0 : i32
    %c0_i32_0 = arith.constant 0 : i32
    %c0_i32_1 = arith.constant 0 : i32
    return %c0_i32, %c0_i32_0 : i32, i32
  }
  func.func @transform_10(%arg0: i32) -> (i32, i32) {
    %c0_i32 = arith.constant 0 : i32
    %c0_i32_0 = arith.constant 0 : i32
    %c0_i32_1 = arith.constant 0 : i32
    return %c0_i32, %c0_i32_0 : i32, i32
  }
  func.func @transform_11(%arg0: i32) -> (i32, i32) {
    %c0_i32 = arith.constant 0 : i32
    %c0_i32_0 = arith.constant 0 : i32
    return %arg0, %c0_i32 : i32, i32
  }
  func.func @transform_12(%arg0: i32) -> (i32, i32) {
    %c0_i32 = arith.constant 0 : i32
    %c0_i32_0 = arith.constant 0 : i32
    return %arg0, %c0_i32 : i32, i32
  }
}

</mosaic_0001>

<bundles_post_ra>
// kernel: tpu_custom_call.1
= control target key start
LH: loop header
LB: loop body
LE: loop exit
PB: predicated region body
PF: predicated region fallthrough
CT: control target
= control target key end

     0   :  { %s1753_s0 = inlined_call_operand.vmem [shape: f32[256,64], index: 0, kind: input, shape index: {}]   ;;  %s1754_s1 = inlined_call_operand.vmem [shape: f32[64,128], index: 1, kind: input, shape index: {}]   ;;  %s1755_s2 = inlined_call_operand.vmem [shape: f32[1,128], index: 2, kind: input, shape index: {}]   ;;  %s1756_s3 = inlined_call_operand.vmem [shape: f32[1,128], index: 3, kind: input, shape index: {}]   ;;  %s1757_s4 = inlined_call_operand.vmem [shape: f32[1,128], index: 4, kind: input, shape index: {}]   ;;  %s1758_s5 = inlined_call_operand.vmem [shape: f32[128,128], index: 5, kind: input, shape index: {}]   ;;  %s1759_s6 = inlined_call_operand.vmem [shape: f32[1,128], index: 6, kind: input, shape index: {}]   ;;  %s1760_s7 = inlined_call_operand.vmem [shape: f32[1,128], index: 7, kind: input, shape index: {}]   ;;  %s1761_s8 = inlined_call_operand.vmem [shape: f32[1,128], index: 8, kind: input, shape index: {}]   ;;  %s1762_s9 = inlined_call_operand.vmem [shape: f32[128,128], index: 9, kind: input, shape index: {}]   ;;  %s1763_s10 = inlined_call_operand.vmem [shape: f32[1,128], index: 10, kind: input, shape index: {}]   ;;  %s1764_s11 = inlined_call_operand.hbm [shape: f32[256,128], index: 11, kind: output, shape index: {0}]   ;;  %s1765_s12 = inlined_call_operand.hbm [shape: f32[256,128], index: 12, kind: output, shape index: {1}]  }
   0x1   :  { %1768 = sst [smem:[#allocation10_spill]] %s1753_s0 }
   0x2   :  { %1769 = sst [smem:[#allocation11_spill]] %s1754_s1 }
   0x3   :  { %1770 = sst [smem:[#allocation12_spill]] %s1755_s2 }
   0x4   :  { %18 = vsyncpa [#allocation3], 0 }
   0x5   :  { %20 = vsyncpa [#allocation3 + $0x1], 0 }
   0x6   :  { %21 = vsyncpa [#allocation5], 0 }
   0x7   :  { %23 = vsyncpa [#allocation5 + $0x1], 0  ;;  %s1298_s21 = smov 0   ;;  %s1300_s22 = smov 0  }
   0x8   :  { %s1302_s23 = smov 0   ;;  %s1304_s24 = smov 0  }
   0x9 LB: > { %1771 = sst [smem:[#allocation8_spill]] %s1225_s23  ;;  %s1319_s25 = sadd.s32 4294967295, %s1229_s24   ;;  %s1229_s24 = sphi %s1304_s24, %s1783_s24   ;;  %s1225_s23 = sphi %s1302_s23, %s1780_s23   ;;  %s1221_s22 = sphi %s1300_s22, %s1782_s22   ;;  %s1217_s21 = sphi %s1298_s21, %s1781_s21  }
   0xa   : > { %s1016_s26 = sadd.s32 4294967294, %s1229_s24   ;;  %s1323_s27 = sadd.s32 1, %s1229_s24  }
   0xb   : > { %s272_s28 = sadd.s32 1, %s1225_s23  ;;  %s269_s29 = ssub.s32 %s1229_s24, %s1323_s27 }
   0xc   : > { %p282_p0 = scmp.ne.s32.totalorder %s1225_s23, %s1221_s22  ;;  %p270_p1 = scmp.eq.s32.totalorder %s269_s29, 0 }
   0xd   : > { %p283_p2 = scmp.eq.s32.totalorder %s1319_s25, 1  ;;  %p288_p3 = scmp.ne.s32.totalorder %s1221_s22, %s1217_s21 }
   0xe   : > { %p289_p4 = scmp.eq.s32.totalorder %s1016_s26, 1  ;;  %p1019_p7 = scmp.ge.s32.totalorder %s1229_s24, 1 }
   0xf   : > { %s1334_s30 = scalar_select %p270_p1, %s1225_s23, %s272_s28  }
  0x10   : > { %p1336_p5 = por %p283_p2, %p282_p0  ;;  %p1340_p6 = por %p289_p4, %p288_p3 }
  0x11   : > { %1772 = sst [smem:[#allocation9_spill]] %s1334_s30  ;;  %p372_p8 = scmp.lt.s32.totalorder %s1229_s24, 3 }
  0x13   : > { %p373_p9 = pnand %p1019_p7, %p372_p8 }
  0x14   : > { %s1775_s1 = sld [smem:[#allocation11_spill]] (!%p373_p9)  ;;  %s1022_s19 = sshll.u32 (!%p373_p9), %s1319_s25, 4 }
  0x15   : > { %376 = sbr.rel (%p373_p9) target bundleno = 573 (0x23d), region = 64  ;;  %p420_p10 = scmp.lt.s32.totalorder (!%p373_p9), %s1022_s19, 31 }
  0x16   : > { %s1776_s0 = sld [smem:[#allocation10_spill]] (!%p373_p9)  ;;  %s1767_s28 = sshll.u32 (!%p373_p9), %s1319_s25, 7 }
  0x17   : > { %s1777_s2 = sld [smem:[#allocation12_spill]] (!%p373_p9)  ;;  %s900_s23 = scalar_lea.hbm (!%p373_p9), %s1764_s11, %s1767_s28 }
  0x18   : > { %s1155_s30 = scalar_lea.hbm (!%p373_p9), %s1764_s11, 256 }
  0x1a   : > { %v450_v0 = vld [vmem:[%s1775_s1 + $0x38] sm:$0xff]  ;;  %v449_v1 = vld [vmem:[%s1775_s1 + $0x30] sm:$0xff]  ;;  %v448_v2 = vld [vmem:[%s1775_s1 + $0x28] sm:$0xff]  ;;  %s1785_s19 = smov (!%p420_p10, %s1022_s19), 31  ;;  %vm455_vm0 = vcmask 523264  }
  0x1b   : > { %512 = vmatpush.msra.mxu0 %v450_v0  ;;  %v447_v3 = vld [vmem:[%s1775_s1 + $0x20] sm:$0xff]  ;;  %v446_v4 = vld [vmem:[%s1775_s1 + $0x18] sm:$0xff]  ;;  %s1023_s17 = sshll.u32 %s1785_s19, 3  ;;  %v445_v5 = vld [vmem:[%s1775_s1 + $0x10] sm:$0xff]  ;;  %s1573_s19 = sand.u32 1, %s1221_s22  }
  0x1c   : > { %v444_v6 = vld [vmem:[%s1775_s1 + $0x8] sm:$0xff]  ;;  %s1371_s29 = scalar_lea.vmem %s1776_s0, %s1023_s17  ;;  %v443_v7 = vld [vmem:[%s1775_s1] sm:$0xff]  ;;  %v640_v17 = vld [vmem:[%s1758_s5 + $0x78] sm:$0xff]  ;;  %s1020_s15 = sshll.u32 %s1573_s19, 7 }
  0x1d   : > { %513 = vmatpush.msra.mxu0 %v449_v1  ;;  %v427_v8 = vld [vmem:[%s1371_s29] sm:$0xff]  ;;  %v428_v9 = vld [vmem:[%s1371_s29 + $0x8] sm:$0xff]  ;;  %v429_v10 = vld [vmem:[%s1371_s29 + $0x10] sm:$0xff]  ;;  %645 = vmatpush.msra.mxu1 %v640_v17  ;;  %s1592_s18 = scalar_lea.vmem [#allocation2], %s1020_s15  ;;  %s903_s17 = sshll.u32 %s900_s23, 4  ;;  %s904_s17 = int_to_ptr.hbm [resolvable:$true] %s903_s17 }
  0x1e   : > { %v430_v11 = vld [vmem:[%s1371_s29 + $0x18] sm:$0xff]  ;;  %v431_v12 = vld [vmem:[%s1371_s29 + $0x20] sm:$0xff]  ;;  %v432_v13 = vld [vmem:[%s1371_s29 + $0x28] sm:$0xff]  ;;  %1050 = vmatpush.msra.mxu3 %v640_v17  ;;  %s901_s16 = sshll.u32 %s1592_s18, 4  ;;  %s1669_s0 = scalar_lea.vmem [#allocation4], %s1020_s15  ;;  %s902_s16 = int_to_ptr.vmem [resolvable:$true] %s901_s16 }
  0x1f   : > { %514 = vmatpush.msra.mxu0 %v448_v2  ;;  %v433_v14 = vld [vmem:[%s1371_s29 + $0x30] sm:$0xff]  ;;  %v434_v15 = vld [vmem:[%s1371_s29 + $0x38] sm:$0xff]  ;;  %v435_v16 = vld [vmem:[%s1371_s29 + $0x40] sm:$0xff]  ;;  %s884_s20 = scalar_lea.sflag [#allocation3], %s1573_s19  ;;  %s1149_s26 = sshra.s32 %s904_s17, 4  ;;  %s1150_s26 = int_to_ptr.hbm [resolvable:$true] %s1149_s26 }
  0x20   : > { %v436_v18 = vld [vmem:[%s1371_s29 + $0x48] sm:$0xff]  ;;  %v639_v19 = vld [vmem:[%s1758_s5 + $0x70] sm:$0xff]  ;;  %v637_v21 = vld [vmem:[%s1758_s5 + $0x60] sm:$0xff]  ;;  %s1151_s1 = scalar_lea.hbm %s1150_s26, 128  ;;  %p1156_p0 = scmp.lt.s32.totalorder %s1150_s26, %s1764_s11 }
  0x21   : > { %515 = vmatpush.msra.mxu0 %v447_v3  ;;  %v638_v20 = vld [vmem:[%s1758_s5 + $0x68] sm:$0xff]  ;;  %646 = vmatpush.msra.mxu1 %v639_v19  ;;  %v636_v22 = vld [vmem:[%s1758_s5 + $0x58] sm:$0xff]  ;;  %v437_v23 = vld [vmem:[%s1371_s29 + $0x50] sm:$0xff]  ;;  %p1152_p11 = scmp.ne.s32.totalorder %s1150_s26, %s1151_s1  ;;  %p1157_p1 = scmp.lt.s32.totalorder %s1155_s30, %s1151_s1 }
  0x22   : > { %1051 = vmatpush.msra.mxu3 %v639_v19  ;;  %v635_v24 = vld [vmem:[%s1758_s5 + $0x50] sm:$0xff]  ;;  %v634_v25 = vld [vmem:[%s1758_s5 + $0x48] sm:$0xff]  ;;  %v633_v26 = vld [vmem:[%s1758_s5 + $0x40] sm:$0xff] }
  0x23   : > { %516 = vmatpush.msra.mxu0 %v446_v4  ;;  %647 = vmatpush.msra.mxu1 %v638_v20  ;;  %v632_v27 = vld [vmem:[%s1758_s5 + $0x38] sm:$0xff]  ;;  %v631_v29 = vld [vmem:[%s1758_s5 + $0x30] sm:$0xff]  ;;  %v630_v30 = vld [vmem:[%s1758_s5 + $0x28] sm:$0xff]  ;;  %p1153_p12 = pnand %p1152_p11, %p1336_p5  ;;  %p1158_p2 = por %p1157_p1, %p1156_p0 }
  0x24   : > { %1052 = vmatpush.msra.mxu3 %v638_v20  ;;  %v438_v28 = vld [vmem:[%s1371_s29 + $0x58] sm:$0xff]  ;;  %v629_v31 = vld [vmem:[%s1758_s5 + $0x20] sm:$0xff]  ;;  %v627_v34 = vld [vmem:[%s1758_s5 + $0x10] sm:$0xff] }
  0x25   : > { %517 = vmatpush.msra.mxu0 %v445_v5  ;;  %648 = vmatpush.msra.mxu1 %v637_v21  ;;  %v439_v32 = vld [vmem:[%s1371_s29 + $0x60] sm:$0xff]  ;;  %v628_v33 = vld [vmem:[%s1758_s5 + $0x18] sm:$0xff]  ;;  %v626_v35 = vld [vmem:[%s1758_s5 + $0x8] sm:$0xff]  ;;  %p1154_p13 = pneg %p1153_p12 }
  0x26   : > { %1053 = vmatpush.msra.mxu3 %v637_v21  ;;  %v625_v36 = vld [vmem:[%s1758_s5] sm:$0xff]  ;;  %v440_v37 = vld [vmem:[%s1371_s29 + $0x68] sm:$0xff]  ;;  %v441_v38 = vld [vmem:[%s1371_s29 + $0x70] sm:$0xff] }
  0x27   : > { %518 = vmatpush.msra.mxu0 %v444_v6  ;;  %649 = vmatpush.msra.mxu1 %v636_v22  ;;  %v442_v39 = vld [vmem:[%s1371_s29 + $0x78] sm:$0xff]  ;;  %v1459_v40 = vld [vmem:[%s1777_s2] ss:$0 sm:$0xff]  ;;  %p1159_p3 = pnand %p1158_p2, %p1154_p13 }
  0x28   : > { %1054 = vmatpush.msra.mxu3 %v636_v22  ;;  %v1465_v43 = vld [vmem:[%s1756_s3] ss:$0 sm:$0xff] }
  0x29   : > { %519 = vmatpush.msra.mxu0 %v443_v7  ;;  %650 = vmatpush.msra.mxu1 %v635_v24  ;;  %v1470_v45 = vld [vmem:[%s1757_s4] ss:$0 sm:$0xff] }
  0x2a   : > { %1024 = vmatmul.msk.f32.vlgmr.msra.gmra.mxu0 %vm455_vm0, %v427_v8  ;;  %1055 = vmatpush.msra.mxu3 %v635_v24 }
  0x2b   : > { %651 = vmatpush.msra.mxu1 %v634_v25 }
  0x2c   : > { %1056 = vmatpush.msra.mxu3 %v634_v25 }
  0x2d   : > { %652 = vmatpush.msra.mxu1 %v633_v26 }
  0x2e   : > { %1057 = vmatpush.msra.mxu3 %v633_v26 }
  0x2f   : > { %653 = vmatpush.msra.mxu1 %v632_v27 }
  0x30   : > { %1058 = vmatpush.msra.mxu3 %v632_v27 }
  0x31   : > { %654 = vmatpush.msra.mxu1 %v631_v29 }
  0x32   : > { %1025 = vmatmul.msk.f32.gmra.mxu0 %vm455_vm0, %v428_v9  ;;  %1059 = vmatpush.msra.mxu3 %v631_v29  ;;  %v797_v29 = vld [vmem:[%s1762_s9 + $0x78] sm:$0xff] }
  0x33   : > { %655 = vmatpush.msra.mxu1 %v630_v30  ;;  %802 = vmatpush.msra.mxu2 %v797_v29 }
  0x34   : > { %1060 = vmatpush.msra.mxu3 %v630_v30 }
  0x35   : > { %656 = vmatpush.msra.mxu1 %v629_v31 }
  0x36   : > { %1061 = vmatpush.msra.mxu3 %v629_v31 }
  0x37   : > { %657 = vmatpush.msra.mxu1 %v628_v33 }
  0x38   : > { %1062 = vmatpush.msra.mxu3 %v628_v33 }
  0x39   : > { %658 = vmatpush.msra.mxu1 %v627_v34 }
  0x3a   : > { %1026 = vmatmul.msk.f32.gmra.mxu0 %vm455_vm0, %v429_v10  ;;  %1063 = vmatpush.msra.mxu3 %v627_v34  ;;  %v795_v34 = vld [vmem:[%s1762_s9 + $0x68] sm:$0xff] }
  0x3b   : > { %659 = vmatpush.msra.mxu1 %v626_v35 }
  0x3c   : > { %1064 = vmatpush.msra.mxu3 %v626_v35 }
  0x3d   : > { %660 = vmatpush.msra.mxu1 %v625_v36 }
  0x3e   : > { %1065 = vmatpush.msra.mxu3 %v625_v36  ;;  %v794_v36 = vld [vmem:[%s1762_s9 + $0x60] sm:$0xff] }
  0x40   : > { %1066 = vmatpush.msrb.mxu3 %v797_v29 }
  0x42   : > { %1027 = vmatmul.msk.f32.gmra.mxu0 %vm455_vm0, %v430_v11 }
  0x4a   : > { %1028 = vmatmul.msk.f32.gmra.mxu0 %vm455_vm0, %v431_v12 }
  0x52   : > { %1029 = vmatmul.msk.f32.gmra.mxu0 %vm455_vm0, %v432_v13 }
  0x5a   : > { %1030 = vmatmul.msk.f32.gmra.mxu0 %vm455_vm0, %v433_v14 }
  0x62   : > { %1031 = vmatmul.msk.f32.gmra.mxu0 %vm455_vm0, %v434_v15 }
  0x6a   : > { %1032 = vmatmul.msk.f32.gmra.mxu0 %vm455_vm0, %v435_v16 }
  0x72   : > { %1033 = vmatmul.msk.f32.gmra.mxu0 %vm455_vm0, %v436_v18 }
  0x7a   : > { %1034 = vmatmul.msk.f32.gmra.mxu0 %vm455_vm0, %v437_v23 }
  0x82   : > { %1035 = vmatmul.msk.f32.gmra.mxu0 %vm455_vm0, %v438_v28 }
  0x8a   : > { %1036 = vmatmul.msk.f32.gmra.mxu0 %vm455_vm0, %v439_v32  ;;  %v796_v32 = vld [vmem:[%s1762_s9 + $0x70] sm:$0xff] }
  0x8b   : > { %803 = vmatpush.msra.mxu2 %v796_v32  ;;  %1067 = vmatpush.msrb.mxu3 %v796_v32 }
  0x8d   : > { %804 = vmatpush.msra.mxu2 %v795_v34  ;;  %1068 = vmatpush.msrb.mxu3 %v795_v34 }
  0x8f   : > { %805 = vmatpush.msra.mxu2 %v794_v36  ;;  %1069 = vmatpush.msrb.mxu3 %v794_v36 }
  0x92   : > { %1037 = vmatmul.msk.f32.gmra.mxu0 %vm455_vm0, %v440_v37 }
  0x9a   : > { %1038 = vmatmul.msk.f32.gmra.mxu0 %vm455_vm0, %v441_v38  ;;  %v793_v38 = vld [vmem:[%s1762_s9 + $0x58] sm:$0xff] }
  0x9b   : > { %806 = vmatpush.msra.mxu2 %v793_v38  ;;  %1070 = vmatpush.msrb.mxu3 %v793_v38 }
  0xa2   : > { %1039 = vmatmul.msk.f32.gmra.mxu0 %vm455_vm0, %v442_v39 }
  0xa7   : > { %v521_v41 = vpop.f32.mrf.mxu0 }
  0xa8   : > { %v522_v42 = vadd.f32 %v1459_v40, %v521_v41 }
  0xaa   : > { %v569_v44 = vmax.f32 %v522_v42, 0.0  ;;  %v792_v42 = vld [vmem:[%s1762_s9 + $0x50] sm:$0xff] }
  0xab   : > { %807 = vmatpush.msra.mxu2 %v792_v42  ;;  %1071 = vmatpush.msrb.mxu3 %v792_v42 }
  0xac   : > { %v589_v46 = vmul.f32 %v1465_v43, %v569_v44 }
  0xae   : > { %v609_v47 = vadd.f32 %v1470_v45, %v589_v46  ;;  %v791_v46 = vld [vmem:[%s1762_s9 + $0x48] sm:$0xff] }
  0xaf   : > { %v524_v48 = vpop.f32.mrf.mxu0  ;;  %808 = vmatpush.msra.mxu2 %v791_v46  ;;  %1072 = vmatpush.msrb.mxu3 %v791_v46 }
  0xb0   : > { %v525_v49 = vadd.f32 %v1459_v40, %v524_v48  ;;  %661 = vmatmul.f32.vlgmr.msra.gmra.mxu1 %v609_v47  ;;  %v790_v48 = vld [vmem:[%s1762_s9 + $0x40] sm:$0xff] }
  0xb1   : > { %809 = vmatpush.msra.mxu2 %v790_v48  ;;  %1073 = vmatpush.msrb.mxu3 %v790_v48 }
  0xb2   : > { %v570_v50 = vmax.f32 %v525_v49, 0.0  ;;  %v789_v49 = vld [vmem:[%s1762_s9 + $0x38] sm:$0xff] }
  0xb3   : > { %810 = vmatpush.msra.mxu2 %v789_v49  ;;  %1074 = vmatpush.msrb.mxu3 %v789_v49 }
  0xb4   : > { %v590_v51 = vmul.f32 %v1465_v43, %v570_v50 }
  0xb6   : > { %v610_v52 = vadd.f32 %v1470_v45, %v590_v51 }
  0xb7   : > { %v527_v53 = vpop.f32.mrf.mxu0 }
  0xb8   : > { %v528_v54 = vadd.f32 %v1459_v40, %v527_v53  ;;  %664 = vmatmul.f32.gmra.mxu1 %v610_v52  ;;  %v788_v53 = vld [vmem:[%s1762_s9 + $0x30] sm:$0xff] }
  0xb9   : > { %811 = vmatpush.msra.mxu2 %v788_v53  ;;  %1075 = vmatpush.msrb.mxu3 %v788_v53 }
  0xba   : > { %v571_v55 = vmax.f32 %v528_v54, 0.0  ;;  %v787_v54 = vld [vmem:[%s1762_s9 + $0x28] sm:$0xff] }
  0xbb   : > { %812 = vmatpush.msra.mxu2 %v787_v54  ;;  %1076 = vmatpush.msrb.mxu3 %v787_v54 }
  0xbc   : > { %v591_v56 = vmul.f32 %v1465_v43, %v571_v55 }
  0xbe   : > { %v611_v57 = vadd.f32 %v1470_v45, %v591_v56 }
  0xbf   : > { %v530_v58 = vpop.f32.mrf.mxu0 }
  0xc0   : > { %v531_v59 = vadd.f32 %v1459_v40, %v530_v58  ;;  %667 = vmatmul.f32.gmra.mxu1 %v611_v57  ;;  %v786_v57 = vld [vmem:[%s1762_s9 + $0x20] sm:$0xff] }
  0xc1   : > { %813 = vmatpush.msra.mxu2 %v786_v57  ;;  %1077 = vmatpush.msrb.mxu3 %v786_v57 }
  0xc2   : > { %v572_v60 = vmax.f32 %v531_v59, 0.0  ;;  %v785_v59 = vld [vmem:[%s1762_s9 + $0x18] sm:$0xff] }
  0xc3   : > { %814 = vmatpush.msra.mxu2 %v785_v59  ;;  %1078 = vmatpush.msrb.mxu3 %v785_v59 }
  0xc4   : > { %v592_v61 = vmul.f32 %v1465_v43, %v572_v60 }
  0xc6   : > { %v612_v62 = vadd.f32 %v1470_v45, %v592_v61 }
  0xc7   : > { %v533_v63 = vpop.f32.mrf.mxu0 }
  0xc8   : > { %v534_v0 = vadd.f32 %v1459_v40, %v533_v63  ;;  %670 = vmatmul.f32.gmra.mxu1 %v612_v62  ;;  %v784_v62 = vld [vmem:[%s1762_s9 + $0x10] sm:$0xff] }
  0xc9   : > { %815 = vmatpush.msra.mxu2 %v784_v62  ;;  %1079 = vmatpush.msrb.mxu3 %v784_v62 }
  0xca   : > { %v573_v1 = vmax.f32 %v534_v0, 0.0  ;;  %v783_v0 = vld [vmem:[%s1762_s9 + $0x8] sm:$0xff] }
  0xcb   : > { %816 = vmatpush.msra.mxu2 %v783_v0  ;;  %1080 = vmatpush.msrb.mxu3 %v783_v0 }
  0xcc   : > { %v593_v2 = vmul.f32 %v1465_v43, %v573_v1 }
  0xce   : > { %v613_v3 = vadd.f32 %v1470_v45, %v593_v2  ;;  %v782_v2 = vld [vmem:[%s1762_s9] sm:$0xff] }
  0xcf   : > { %v536_v4 = vpop.f32.mrf.mxu0  ;;  %817 = vmatpush.msra.mxu2 %v782_v2  ;;  %1081 = vmatpush.msrb.mxu3 %v782_v2 }
  0xd0   : > { %v537_v5 = vadd.f32 %v1459_v40, %v536_v4  ;;  %673 = vmatmul.f32.gmra.mxu1 %v613_v3 }
  0xd2   : > { %v574_v6 = vmax.f32 %v537_v5, 0.0 }
  0xd4   : > { %v594_v7 = vmul.f32 %v1465_v43, %v574_v6 }
  0xd6   : > { %v614_v8 = vadd.f32 %v1470_v45, %v594_v7 }
  0xd7   : > { %v539_v9 = vpop.f32.mrf.mxu0 }
  0xd8   : > { %v540_v10 = vadd.f32 %v1459_v40, %v539_v9  ;;  %676 = vmatmul.f32.gmra.mxu1 %v614_v8 }
  0xda   : > { %v575_v11 = vmax.f32 %v540_v10, 0.0 }
  0xdc   : > { %v595_v12 = vmul.f32 %v1465_v43, %v575_v11 }
  0xde   : > { %v615_v13 = vadd.f32 %v1470_v45, %v595_v12 }
  0xdf   : > { %v542_v14 = vpop.f32.mrf.mxu0 }
  0xe0   : > { %v543_v15 = vadd.f32 %v1459_v40, %v542_v14  ;;  %679 = vmatmul.f32.gmra.mxu1 %v615_v13  ;;  %v1570_v14 = vld [vmem:[%s1759_s6] ss:$0 sm:$0xff] }
  0xe2   : > { %v576_v16 = vmax.f32 %v543_v15, 0.0 }
  0xe4   : > { %v596_v17 = vmul.f32 %v1465_v43, %v576_v16 }
  0xe6   : > { %v616_v18 = vadd.f32 %v1470_v45, %v596_v17 }
  0xe7   : > { %v545_v19 = vpop.f32.mrf.mxu0 }
  0xe8   : > { %v546_v20 = vadd.f32 %v1459_v40, %v545_v19  ;;  %682 = vmatmul.f32.gmra.mxu1 %v616_v18 }
  0xea   : > { %v577_v21 = vmax.f32 %v546_v20, 0.0 }
  0xec   : > { %v597_v22 = vmul.f32 %v1465_v43, %v577_v21 }
  0xee   : > { %v617_v23 = vadd.f32 %v1470_v45, %v597_v22 }
  0xef   : > { %v548_v24 = vpop.f32.mrf.mxu0 }
  0xf0   : > { %v549_v25 = vadd.f32 %v1459_v40, %v548_v24  ;;  %685 = vmatmul.f32.gmra.mxu1 %v617_v23 }
  0xf2   : > { %v578_v26 = vmax.f32 %v549_v25, 0.0 }
  0xf4   : > { %v598_v27 = vmul.f32 %v1465_v43, %v578_v26 }
  0xf6   : > { %v618_v28 = vadd.f32 %v1470_v45, %v598_v27 }
  0xf7   : > { %v551_v30 = vpop.f32.mrf.mxu0 }
  0xf8   : > { %v552_v31 = vadd.f32 %v1459_v40, %v551_v30  ;;  %688 = vmatmul.f32.gmra.mxu1 %v618_v28 }
  0xfa   : > { %v579_v33 = vmax.f32 %v552_v31, 0.0 }
  0xfc   : > { %v599_v35 = vmul.f32 %v1465_v43, %v579_v33 }
  0xfe   : > { %v619_v37 = vadd.f32 %v1470_v45, %v599_v35 }
  0xff   : > { %v554_v39 = vpop.f32.mrf.mxu0 }
 0x100   : > { %v555_v41 = vadd.f32 %v1459_v40, %v554_v39  ;;  %691 = vmatmul.f32.gmra.mxu1 %v619_v37 }
 0x102   : > { %v580_v44 = vmax.f32 %v555_v41, 0.0 }
 0x104   : > { %v600_v47 = vmul.f32 %v1465_v43, %v580_v44 }
 0x106   : > { %v620_v50 = vadd.f32 %v1470_v45, %v600_v47 }
 0x107   : > { %v557_v51 = vpop.f32.mrf.mxu0 }
 0x108   : > { %v558_v52 = vadd.f32 %v1459_v40, %v557_v51  ;;  %694 = vmatmul.f32.gmra.mxu1 %v620_v50 }
 0x10a   : > { %v581_v55 = vmax.f32 %v558_v52, 0.0 }
 0x10c   : > { %v601_v56 = vmul.f32 %v1465_v43, %v581_v55 }
 0x10e   : > { %v621_v58 = vadd.f32 %v1470_v45, %v601_v56 }
 0x10f   : > { %v560_v60 = vpop.f32.mrf.mxu0 }
 0x110   : > { %v561_v61 = vadd.f32 %v1459_v40, %v560_v60  ;;  %697 = vmatmul.f32.vlgmr.msra.gmra.mxu3 %v621_v58 }
 0x112   : > { %v582_v63 = vmax.f32 %v561_v61, 0.0 }
 0x114   : > { %v602_v1 = vmul.f32 %v1465_v43, %v582_v63 }
 0x116   : > { %v622_v3 = vadd.f32 %v1470_v45, %v602_v1 }
 0x117   : > { %v563_v4 = vpop.f32.mrf.mxu0 }
 0x118   : > { %v564_v5 = vadd.f32 %v1459_v40, %v563_v4  ;;  %700 = vmatmul.f32.gmra.mxu3 %v622_v3 }
 0x11a   : > { %v583_v6 = vmax.f32 %v564_v5, 0.0 }
 0x11c   : > { %v603_v7 = vmul.f32 %v1465_v43, %v583_v6 }
 0x11e   : > { %v623_v8 = vadd.f32 %v1470_v45, %v603_v7 }
 0x11f   : > { %v566_v9 = vpop.f32.mrf.mxu0 }
 0x120   : > { %v567_v10 = vadd.f32 %v1459_v40, %v566_v9  ;;  %703 = vmatmul.f32.gmra.mxu3 %v623_v8  ;;  %v1579_v40 = vld [vmem:[%s1760_s7] ss:$0 sm:$0xff] }
 0x122   : > { %v584_v11 = vmax.f32 %v567_v10, 0.0 }
 0x124   : > { %v604_v12 = vmul.f32 %v1465_v43, %v584_v11 }
 0x126   : > { %v624_v13 = vadd.f32 %v1470_v45, %v604_v12  ;;  %v1585_v45 = vld [vmem:[%s1761_s8] ss:$0 sm:$0xff] }
 0x128   : > { %706 = vmatmul.f32.gmra.mxu3 %v624_v13 }
 0x12d   : > { %v662_v15 = vpop.f32.mrf.mxu1 }
 0x12e   : > { %v663_v16 = vadd.f32 %v1570_v14, %v662_v15 }
 0x130   : > { %v710_v43 = vmax.f32 %v663_v16, 0.0 }
 0x132   : > { %v730_v17 = vmul.f32 %v1579_v40, %v710_v43 }
 0x134   : > { %v750_v18 = vadd.f32 %v1585_v45, %v730_v17 }
 0x135   : > { %v665_v19 = vpop.f32.mrf.mxu1 }
 0x136   : > { %v666_v20 = vadd.f32 %v1570_v14, %v665_v19  ;;  %766 = vst [vmem:[%s1592_s18] sm:$0xff] %v750_v18  ;;  %818 = vmatmul.f32.vlgmr.msra.gmra.mxu2 %v750_v18 }
 0x138   : > { %v711_v21 = vmax.f32 %v666_v20, 0.0 }
 0x13a   : > { %v731_v22 = vmul.f32 %v1579_v40, %v711_v21 }
 0x13c   : > { %v751_v23 = vadd.f32 %v1585_v45, %v731_v22 }
 0x13d   : > { %v668_v24 = vpop.f32.mrf.mxu1 }
 0x13e   : > { %v669_v25 = vadd.f32 %v1570_v14, %v668_v24  ;;  %767 = vst [vmem:[%s1592_s18 + $0x8] sm:$0xff] %v751_v23  ;;  %821 = vmatmul.f32.gmra.mxu2 %v751_v23 }
 0x140   : > { %v712_v26 = vmax.f32 %v669_v25, 0.0 }
 0x142   : > { %v732_v27 = vmul.f32 %v1579_v40, %v712_v26 }
 0x144   : > { %v752_v28 = vadd.f32 %v1585_v45, %v732_v27 }
 0x145   : > { %v671_v29 = vpop.f32.mrf.mxu1 }
 0x146   : > { %v672_v30 = vadd.f32 %v1570_v14, %v671_v29  ;;  %768 = vst [vmem:[%s1592_s18 + $0x10] sm:$0xff] %v752_v28  ;;  %824 = vmatmul.f32.gmra.mxu2 %v752_v28 }
 0x148   : > { %v713_v31 = vmax.f32 %v672_v30, 0.0 }
 0x14a   : > { %v733_v32 = vmul.f32 %v1579_v40, %v713_v31 }
 0x14c   : > { %v753_v33 = vadd.f32 %v1585_v45, %v733_v32 }
 0x14d   : > { %v674_v34 = vpop.f32.mrf.mxu1 }
 0x14e   : > { %v675_v35 = vadd.f32 %v1570_v14, %v674_v34  ;;  %769 = vst [vmem:[%s1592_s18 + $0x18] sm:$0xff] %v753_v33  ;;  %827 = vmatmul.f32.gmra.mxu2 %v753_v33  ;;  %v1657_v33 = vld [vmem:[%s1763_s10] ss:$0 sm:$0xff] }
 0x150   : > { %v714_v36 = vmax.f32 %v675_v35, 0.0 }
 0x152   : > { %v734_v37 = vmul.f32 %v1579_v40, %v714_v36 }
 0x154   : > { %v754_v38 = vadd.f32 %v1585_v45, %v734_v37 }
 0x155   : > { %v677_v39 = vpop.f32.mrf.mxu1 }
 0x156   : > { %v678_v41 = vadd.f32 %v1570_v14, %v677_v39  ;;  %770 = vst [vmem:[%s1592_s18 + $0x20] sm:$0xff] %v754_v38  ;;  %830 = vmatmul.f32.gmra.mxu2 %v754_v38 }
 0x158   : > { %v715_v42 = vmax.f32 %v678_v41, 0.0 }
 0x15a   : > { %v735_v44 = vmul.f32 %v1579_v40, %v715_v42 }
 0x15c   : > { %v755_v46 = vadd.f32 %v1585_v45, %v735_v44 }
 0x15d   : > { %v680_v47 = vpop.f32.mrf.mxu1 }
 0x15e   : > { %v681_v48 = vadd.f32 %v1570_v14, %v680_v47  ;;  %771 = vst [vmem:[%s1592_s18 + $0x28] sm:$0xff] %v755_v46  ;;  %833 = vmatmul.f32.gmra.mxu2 %v755_v46 }
 0x160   : > { %v716_v49 = vmax.f32 %v681_v48, 0.0 }
 0x162   : > { %v736_v50 = vmul.f32 %v1579_v40, %v716_v49 }
 0x164   : > { %v756_v51 = vadd.f32 %v1585_v45, %v736_v50 }
 0x165   : > { %v683_v52 = vpop.f32.mrf.mxu1 }
 0x166   : > { %v684_v53 = vadd.f32 %v1570_v14, %v683_v52  ;;  %772 = vst [vmem:[%s1592_s18 + $0x30] sm:$0xff] %v756_v51  ;;  %836 = vmatmul.f32.gmra.mxu2 %v756_v51 }
 0x168   : > { %v717_v54 = vmax.f32 %v684_v53, 0.0 }
 0x16a   : > { %v737_v55 = vmul.f32 %v1579_v40, %v717_v54 }
 0x16c   : > { %v757_v56 = vadd.f32 %v1585_v45, %v737_v55 }
 0x16d   : > { %v686_v57 = vpop.f32.mrf.mxu1 }
 0x16e   : > { %v687_v58 = vadd.f32 %v1570_v14, %v686_v57  ;;  %773 = vst [vmem:[%s1592_s18 + $0x38] sm:$0xff] %v757_v56  ;;  %839 = vmatmul.f32.gmra.mxu2 %v757_v56 }
 0x170   : > { %v718_v59 = vmax.f32 %v687_v58, 0.0 }
 0x172   : > { %v738_v60 = vmul.f32 %v1579_v40, %v718_v59 }
 0x174   : > { %v758_v61 = vadd.f32 %v1585_v45, %v738_v60 }
 0x175   : > { %v689_v62 = vpop.f32.mrf.mxu1 }
 0x176   : > { %v690_v63 = vadd.f32 %v1570_v14, %v689_v62  ;;  %774 = vst [vmem:[%s1592_s18 + $0x40] sm:$0xff] %v758_v61  ;;  %842 = vmatmul.f32.gmra.mxu2 %v758_v61 }
 0x178   : > { %v719_v0 = vmax.f32 %v690_v63, 0.0 }
 0x17a   : > { %v739_v1 = vmul.f32 %v1579_v40, %v719_v0 }
 0x17c   : > { %v759_v2 = vadd.f32 %v1585_v45, %v739_v1 }
 0x17d   : > { %v692_v3 = vpop.f32.mrf.mxu1 }
 0x17e   : > { %v693_v4 = vadd.f32 %v1570_v14, %v692_v3  ;;  %775 = vst [vmem:[%s1592_s18 + $0x48] sm:$0xff] %v759_v2  ;;  %845 = vmatmul.f32.gmra.mxu2 %v759_v2 }
 0x180   : > { %v720_v5 = vmax.f32 %v693_v4, 0.0 }
 0x182   : > { %v740_v6 = vmul.f32 %v1579_v40, %v720_v5 }
 0x184   : > { %v760_v7 = vadd.f32 %v1585_v45, %v740_v6 }
 0x185   : > { %v695_v8 = vpop.f32.mrf.mxu1 }
 0x186   : > { %v696_v9 = vadd.f32 %v1570_v14, %v695_v8  ;;  %776 = vst [vmem:[%s1592_s18 + $0x50] sm:$0xff] %v760_v7  ;;  %848 = vmatmul.f32.gmra.mxu2 %v760_v7 }
 0x188   : > { %v721_v10 = vmax.f32 %v696_v9, 0.0 }
 0x18a   : > { %v741_v11 = vmul.f32 %v1579_v40, %v721_v10 }
 0x18c   : > { %v761_v12 = vadd.f32 %v1585_v45, %v741_v11 }
 0x18e   : > { %777 = vst [vmem:[%s1592_s18 + $0x58] sm:$0xff] %v761_v12  ;;  %851 = vmatmul.f32.gmra.mxu2 %v761_v12 }
 0x193   : > { %v698_v13 = vpop.f32.mrf.mxu3 }
 0x194   : > { %v699_v15 = vadd.f32 %v1570_v14, %v698_v13 }
 0x196   : > { %v722_v16 = vmax.f32 %v699_v15, 0.0 }
 0x198   : > { %v742_v43 = vmul.f32 %v1579_v40, %v722_v16 }
 0x19a   : > { %v762_v17 = vadd.f32 %v1585_v45, %v742_v43 }
 0x19b   : > { %v701_v18 = vpop.f32.mrf.mxu3 }
 0x19c   : > { %v702_v19 = vadd.f32 %v1570_v14, %v701_v18  ;;  %778 = vst [vmem:[%s1592_s18 + $0x60] sm:$0xff] %v762_v17  ;;  %854 = vmatmul.f32.vlgmr.msrb.gmra.mxu3 %v762_v17 }
 0x19e   : > { %v723_v20 = vmax.f32 %v702_v19, 0.0 }
 0x1a0   : > { %v743_v21 = vmul.f32 %v1579_v40, %v723_v20 }
 0x1a2   : > { %v763_v22 = vadd.f32 %v1585_v45, %v743_v21 }
 0x1a3   : > { %v704_v23 = vpop.f32.mrf.mxu3 }
 0x1a4   : > { %v705_v24 = vadd.f32 %v1570_v14, %v704_v23  ;;  %779 = vst [vmem:[%s1592_s18 + $0x68] sm:$0xff] %v763_v22  ;;  %857 = vmatmul.f32.gmra.mxu3 %v763_v22 }
 0x1a6   : > { %v724_v25 = vmax.f32 %v705_v24, 0.0 }
 0x1a8   : > { %v744_v26 = vmul.f32 %v1579_v40, %v724_v25 }
 0x1aa   : > { %v764_v27 = vadd.f32 %v1585_v45, %v744_v26 }
 0x1ab   : > { %v707_v28 = vpop.f32.mrf.mxu3 }
 0x1ac   : > { %v708_v29 = vadd.f32 %v1570_v14, %v707_v28  ;;  %780 = vst [vmem:[%s1592_s18 + $0x70] sm:$0xff] %v764_v27  ;;  %860 = vmatmul.f32.gmra.mxu3 %v764_v27 }
 0x1ae   : > { %v725_v30 = vmax.f32 %v708_v29, 0.0 }
 0x1b0   : > { %v745_v31 = vmul.f32 %v1579_v40, %v725_v30 }
 0x1b2   : > { %v765_v32 = vadd.f32 %v1585_v45, %v745_v31 }
 0x1b4   : > { %781 = vst [vmem:[%s1592_s18 + $0x78] sm:$0xff] %v765_v32  ;;  %863 = vmatmul.f32.gmra.mxu3 %v765_v32 }
 0x1b9   : > { %v819_v14 = vpop.f32.mrf.mxu2 }
 0x1ba   : > { %v820_v40 = vadd.f32 %v1657_v33, %v819_v14 }
 0x1bc   : > { %867 = vst [vmem:[%s1669_s0] sm:$0xff] %v820_v40 }
 0x1bd   : > { %1162 = shalt.err (!%p1159_p3)
}
 0x1be   : > { %s1231_s15 = smov 128   ;;  %s1232_s2 = smov 8  }
 0x1bf   : > { %1082 = dma.vmem_to_hbm [thread:$0]  (%p1336_p5), %s902_s16, 2048, %s904_s17, %s884_s20, %s1231_s15, %s1231_s15, %s1232_s2  }
 0x1c0   : > { %s1778_s1 = sshll.u32 %s1319_s25, 7  ;;  %s918_s20 = sshll.u32 %s1669_s0, 4  ;;  %s919_s20 = int_to_ptr.vmem [resolvable:$true] %s918_s20 }
 0x1c1   : > { %v822_v45 = vpop.f32.mrf.mxu2  ;;  %s917_s17 = scalar_lea.hbm %s1765_s12, %s1778_s1  ;;  %s889_s29 = scalar_lea.sflag [#allocation5], %s1573_s19 }
 0x1c2   : > { %v823_v34 = vadd.f32 %v1657_v33, %v822_v45  ;;  %s920_s26 = sshll.u32 %s917_s17, 4  ;;  %s1183_s1 = scalar_lea.hbm %s1765_s12, 256  ;;  %s921_s26 = int_to_ptr.hbm [resolvable:$true] %s920_s26 }
 0x1c3   : > { %s1177_s18 = sshra.s32 %s921_s26, 4  ;;  %s1178_s18 = int_to_ptr.hbm [resolvable:$true] %s1177_s18 }
 0x1c4   : > { %868 = vst [vmem:[%s1669_s0 + $0x8] sm:$0xff] %v823_v34  ;;  %s1179_s30 = scalar_lea.hbm %s1178_s18, 128  ;;  %p1184_p9 = scmp.lt.s32.totalorder %s1178_s18, %s1765_s12 }
 0x1c5   : > { %p1180_p4 = scmp.ne.s32.totalorder %s1178_s18, %s1179_s30  ;;  %p1185_p10 = scmp.lt.s32.totalorder %s1183_s1, %s1179_s30 }
 0x1c7   : > { %p1181_p7 = pnand %p1180_p4, %p1336_p5  ;;  %p1186_p11 = por %p1185_p10, %p1184_p9 }
 0x1c9   : > { %v825_v35 = vpop.f32.mrf.mxu2  ;;  %p1182_p8 = pneg %p1181_p7 }
 0x1ca   : > { %v826_v36 = vadd.f32 %v1657_v33, %v825_v35 }
 0x1cb   : > { %p1187_p12 = pnand %p1186_p11, %p1182_p8 }
 0x1cc   : > { %869 = vst [vmem:[%s1669_s0 + $0x10] sm:$0xff] %v826_v36 }
 0x1d1   : > { %v828_v37 = vpop.f32.mrf.mxu2 }
 0x1d2   : > { %v829_v38 = vadd.f32 %v1657_v33, %v828_v37 }
 0x1d4   : > { %870 = vst [vmem:[%s1669_s0 + $0x18] sm:$0xff] %v829_v38 }
 0x1d9   : > { %v831_v39 = vpop.f32.mrf.mxu2 }
 0x1da   : > { %v832_v41 = vadd.f32 %v1657_v33, %v831_v39 }
 0x1dc   : > { %871 = vst [vmem:[%s1669_s0 + $0x20] sm:$0xff] %v832_v41 }
 0x1e1   : > { %v834_v42 = vpop.f32.mrf.mxu2 }
 0x1e2   : > { %v835_v44 = vadd.f32 %v1657_v33, %v834_v42 }
 0x1e4   : > { %872 = vst [vmem:[%s1669_s0 + $0x28] sm:$0xff] %v835_v44 }
 0x1e9   : > { %v837_v46 = vpop.f32.mrf.mxu2 }
 0x1ea   : > { %v838_v47 = vadd.f32 %v1657_v33, %v837_v46 }
 0x1ec   : > { %873 = vst [vmem:[%s1669_s0 + $0x30] sm:$0xff] %v838_v47 }
 0x1f1   : > { %v840_v48 = vpop.f32.mrf.mxu2 }
 0x1f2   : > { %v841_v49 = vadd.f32 %v1657_v33, %v840_v48 }
 0x1f4   : > { %874 = vst [vmem:[%s1669_s0 + $0x38] sm:$0xff] %v841_v49 }
 0x1f9   : > { %v843_v50 = vpop.f32.mrf.mxu2 }
 0x1fa   : > { %v844_v51 = vadd.f32 %v1657_v33, %v843_v50 }
 0x1fc   : > { %875 = vst [vmem:[%s1669_s0 + $0x40] sm:$0xff] %v844_v51 }
 0x201   : > { %v846_v52 = vpop.f32.mrf.mxu2 }
 0x202   : > { %v847_v53 = vadd.f32 %v1657_v33, %v846_v52 }
 0x204   : > { %876 = vst [vmem:[%s1669_s0 + $0x48] sm:$0xff] %v847_v53 }
 0x209   : > { %v849_v54 = vpop.f32.mrf.mxu2 }
 0x20a   : > { %v850_v55 = vadd.f32 %v1657_v33, %v849_v54 }
 0x20c   : > { %877 = vst [vmem:[%s1669_s0 + $0x50] sm:$0xff] %v850_v55 }
 0x211   : > { %v852_v56 = vpop.f32.mrf.mxu2 }
 0x212   : > { %v853_v57 = vadd.f32 %v1657_v33, %v852_v56 }
 0x214   : > { %878 = vst [vmem:[%s1669_s0 + $0x58] sm:$0xff] %v853_v57 }
 0x21f   : > { %v855_v58 = vpop.f32.mrf.mxu3 }
 0x220   : > { %v856_v59 = vadd.f32 %v1657_v33, %v855_v58 }
 0x222   : > { %879 = vst [vmem:[%s1669_s0 + $0x60] sm:$0xff] %v856_v59 }
 0x227   : > { %v858_v60 = vpop.f32.mrf.mxu3 }
 0x228   : > { %v859_v61 = vadd.f32 %v1657_v33, %v858_v60 }
 0x22a   : > { %880 = vst [vmem:[%s1669_s0 + $0x68] sm:$0xff] %v859_v61 }
 0x22f   : > { %v861_v62 = vpop.f32.mrf.mxu3 }
 0x230   : > { %v862_v63 = vadd.f32 %v1657_v33, %v861_v62 }
 0x232   : > { %881 = vst [vmem:[%s1669_s0 + $0x70] sm:$0xff] %v862_v63 }
 0x237   : > { %v864_v0 = vpop.f32.mrf.mxu3 }
 0x238   : > { %v865_v1 = vadd.f32 %v1657_v33, %v864_v0 }
 0x23a   : > { %882 = vst [vmem:[%s1669_s0 + $0x78] sm:$0xff] %v865_v1 }
 0x23b   : > { %1190 = shalt.err (!%p1187_p12)
}
 0x23c   : > { %1083 = dma.vmem_to_hbm [thread:$0]  (%p1336_p5), %s919_s20, 2048, %s921_s26, %s889_s29, %s1231_s15, %s1231_s15, %s1232_s2  }
 0x23d PF: > { %p1093_p13 = scmp.ge.s32.totalorder %s1229_s24, 2  ;;  %s935_s0 = sand.u32 1, %s1217_s21  }
 0x23e   : > { %s936_s19 = scalar_lea.sflag [#allocation3], %s935_s0 }
 0x23f   : > { %p1087_p0 = pnand %p1093_p13, %p1340_p6 }
 0x241   : > { %p1088_p1 = pneg %p1087_p0 }
 0x243   : > { %1208 = dma.done.wait (%p1088_p1), %s936_s19, 2048  }
 0x244   : > { %1210 = vsyncadd (%p1088_p1), %s936_s19, 4294965248  ;;  %s946_s17 = scalar_lea.sflag [#allocation5], %s935_s0 }
 0x245   : > { %1212 = dma.done.wait (%p1088_p1), %s946_s17, 2048  }
 0x246   : > { %1214 = vsyncadd (%p1088_p1), %s946_s17, 4294965248  ;;  %s1779_s13 = sld [smem:[#allocation8_spill]]  ;;  %p26_p5 = scmp.ge.s32.totalorder %s1323_s27, 4  }
 0x247   : > { %s1780_s23 = sld [smem:[#allocation9_spill]]  ;;  %s1781_s21 = smov %s1221_s22 }
 0x248   : > { %s1783_s24 = smov %s1323_s27  ;;  %28 = sbr.rel (!%p26_p5) target bundleno = 9 (0x9), region = 116 }
 0x24c   : > { %s1782_s22 = smov %s1779_s13 }
 0x24d   :  { %952 = vsyncpa [#allocation3], 1 }
 0x24e   :  { %954 = vsyncpa [#allocation3 + $0x1], 1 }
 0x24f   :  { %955 = vsyncpa [#allocation5], 1 }
 0x250   :  { %957 = vsyncpa [#allocation5 + $0x1], 1 }

</bundles_post_ra>
